<compile_context>
chip_gen: v6e
topology: v6e:2x2x1
jax: 0.10.0
libtpu: 0.0.40
codegen_flags: <defaults>
</compile_context>

<pallas_src>
import jax
import jax.numpy as jnp
from jax import lax
from jax.experimental import pallas as pl
from jax.experimental.pallas import tpu as pltpu

_LANES = 128
_SUBLANES = 8


def _make_kernel(n, block_rows, bpc, total_blocks, has_tail, padded_grid):
    """Builds the tile kernel; all tiling parameters are trace-time static."""

    def kernel(x_ref, t_ref, out_ref):
        c = pl.program_id(0)           # core axis ("parallel")
        j = pl.program_id(1)           # reduction axis ("arbitrary")
        g = c * bpc + j                # global block index

        @pl.when(j == 0)
        def _():
            out_ref[...] = jnp.zeros_like(out_ref)

        x = x_ref[...].astype(jnp.float32)
        t = t_ref[...].astype(jnp.float32)

        # Shared exp(-|x|) feeds both sigmoid and the logit-form BCE.
        e = jnp.exp(-jnp.abs(x))
        log1pe = jnp.log1p(e)
        nlog_p = jnp.maximum(-x, 0.0) + log1pe      # -log(sigmoid(x))
        nlog_1mp = jnp.maximum(x, 0.0) + log1pe     # -log(1 - sigmoid(x))
        # PyTorch's binary_cross_entropy clamps log terms at -100.
        bce = (t * jnp.minimum(nlog_p, 100.0)
               + (1.0 - t) * jnp.minimum(nlog_1mp, 100.0))
        p = jnp.where(x >= 0.0, 1.0, e) / (1.0 + e)  # sigmoid(x)

        vals = (p * t, p, t, bce)

        def accumulate(valid):
            for k, v in enumerate(vals):
                if valid is not None:
                    v = jnp.where(valid, v, 0.0)
                # (block_rows,128) -> (block_rows//8, 8, 128); leading-axis sum
                # is pure VPU vreg adds (no cross-lane reduce per tile).
                out_ref[k] += v.reshape(-1, _SUBLANES, _LANES).sum(axis=0)

        if has_tail:
            @pl.when(g < total_blocks - 1)
            def _():
                accumulate(None)

            @pl.when(g == total_blocks - 1)
            def _():
                full_rows = n // _LANES
                rem = n % _LANES
                row = (lax.broadcasted_iota(jnp.int32, (block_rows, _LANES), 0)
                       + g * block_rows)
                col = lax.broadcasted_iota(jnp.int32, (block_rows, _LANES), 1)
                valid = (row < full_rows) | ((row == full_rows) & (col < rem))
                accumulate(valid)
        elif padded_grid:
            @pl.when(g < total_blocks)
            def _():
                accumulate(None)
        else:
            accumulate(None)

    return kernel


def dice_bce_loss(outputs, targets, smooth=1.0, *, block_rows=4096):
    """Equivalent of DiceBCELoss().forward(outputs, targets, smooth)."""
    n = outputs.size
    assert targets.size == n

    x = jnp.ravel(outputs)
    t = jnp.ravel(targets)

    # Pad only to the minimal (8, 128) tiling granularity when ragged.
    min_tile = _SUBLANES * _LANES
    n_pad = ((n + min_tile - 1) // min_tile) * min_tile
    if n_pad != n:
        x = jnp.pad(x, (0, n_pad - n))
        t = jnp.pad(t, (0, n_pad - n))

    x = x.reshape(-1, _LANES)
    t = t.reshape(-1, _LANES)
    rows = x.shape[0]                                   # multiple of 8

    bm = min(block_rows, rows)
    bm = max(_SUBLANES, (bm // _SUBLANES) * _SUBLANES)  # multiple of 8

    total_blocks = (rows + bm - 1) // bm
    nc = 2 if total_blocks >= 2 else 1                  # 2-way TC split on v7x
    bpc = (total_blocks + nc - 1) // nc                 # blocks per core
    padded_grid = nc * bpc > total_blocks
    has_tail = n < total_blocks * bm * _LANES

    if padded_grid:
        def in_map(c, j):
            return (jnp.minimum(c * bpc + j, total_blocks - 1), 0)
    else:
        def in_map(c, j):
            return (c * bpc + j, 0)

    kernel = _make_kernel(n, bm, bpc, total_blocks, has_tail, padded_grid)

    partials = pl.pallas_call(
        kernel,
        out_shape=jax.ShapeDtypeStruct((nc * 4, _SUBLANES, _LANES), jnp.float32),
        grid_spec=pltpu.PrefetchScalarGridSpec(
            num_scalar_prefetch=0,
            grid=(nc, bpc),
            in_specs=[
                pl.BlockSpec((bm, _LANES), in_map),
                pl.BlockSpec((bm, _LANES), in_map),
            ],
            out_specs=pl.BlockSpec((4, _SUBLANES, _LANES), lambda c, j: (c, 0, 0)),
        ),
        compiler_params=pltpu.CompilerParams(
            dimension_semantics=("parallel", "arbitrary"),
        ),
    )(x, t)

    sums = jnp.sum(partials.reshape(nc, 4, _SUBLANES, _LANES), axis=(0, 2, 3))
    intersection, p_sum, t_sum, bce_sum = sums[0], sums[1], sums[2], sums[3]

    dice_loss = 1.0 - (2.0 * intersection + smooth) / (p_sum + t_sum + smooth)
    bce = bce_sum / jnp.float32(n)
    return bce + dice_loss


def _reference(outputs, targets, smooth=1.0):
    p = jax.nn.sigmoid(outputs.astype(jnp.float32)).ravel()
    t = targets.astype(jnp.float32).ravel()
    inter = jnp.sum(p * t)
    dice = 1.0 - (2.0 * inter + smooth) / (jnp.sum(p) + jnp.sum(t) + smooth)
    log_p = jnp.maximum(jnp.log(p), -100.0)
    log_1mp = jnp.maximum(jnp.log(1.0 - p), -100.0)
    bce = jnp.mean(-(t * log_p + (1.0 - t) * log_1mp))
    return bce + dice


if __name__ == "__main__":
    key = jax.random.PRNGKey(0)
    k1, k2, k3, k4 = jax.random.split(key, 4)

    # Case A: NCHW like the PyTorch module would see; element count is a
    # multiple of 8*128 -> no padding, no masking, single block.
    out_a = jax.random.normal(k1, (2, 4, 16, 16), dtype=jnp.float32)
    tgt_a = (jax.random.uniform(k2, (2, 4, 16, 16)) > 0.5).astype(jnp.float32)
    loss_a = jax.block_until_ready(dice_bce_loss(out_a, tgt_a, smooth=1.0))
    ref_a = _reference(out_a, tgt_a, smooth=1.0)
    assert jnp.allclose(loss_a, ref_a, rtol=1e-5, atol=1e-5), (loss_a, ref_a)

    # Case B: ragged element count -> minimal host pad + in-kernel tail mask.
    out_b = jax.random.normal(k3, (3, 3, 7, 5), dtype=jnp.float32)
    tgt_b = (jax.random.uniform(k4, (3, 3, 7, 5)) > 0.5).astype(jnp.float32)
    loss_b = jax.block_until_ready(dice_bce_loss(out_b, tgt_b, smooth=1.0))
    ref_b = _reference(out_b, tgt_b, smooth=1.0)
    assert jnp.allclose(loss_b, ref_b, rtol=1e-5, atol=1e-5), (loss_b, ref_b)

    # Case C: 2-core split with a partial (masked) final block.
    out_c = jax.random.normal(k1, (2, 4, 16, 24), dtype=jnp.float32)
    tgt_c = (jax.random.uniform(k2, (2, 4, 16, 24)) > 0.5).astype(jnp.float32)
    loss_c = jax.block_until_ready(
        dice_bce_loss(out_c, tgt_c, smooth=1.0, block_rows=16))
    ref_c = _reference(out_c, tgt_c, smooth=1.0)
    assert jnp.allclose(loss_c, ref_c, rtol=1e-5, atol=1e-5), (loss_c, ref_c)

    # Case D: odd block count -> padded 2-core grid (clamped index_map path).
    loss_d = jax.block_until_ready(
        dice_bce_loss(out_c, tgt_c, smooth=1.0, block_rows=8))
    assert jnp.allclose(loss_d, ref_c, rtol=1e-5, atol=1e-5), (loss_d, ref_c)

    print("KERNEL_OK")
</pallas_src>

<mosaic_0001>
module attributes {stable_mosaic.version = 11 : i64} {
  func.func @kernel(%arg0: i32, %arg1: i32, %arg2: memref<16x128xf32, #tpu.memory_space<vmem>>, %arg3: memref<16x128xf32, #tpu.memory_space<vmem>>, %arg4: memref<4x8x128xf32, #tpu.memory_space<vmem>>) attributes {dimension_semantics = [#tpu.dimension_semantics<parallel>, #tpu.dimension_semantics<arbitrary>], iteration_bounds = array<i64: 1, 1>, scalar_prefetch = 0 : i64, scratch_operands = 0 : i64, tpu.core_type = #tpu.core_type<tc>, window_params = [{transform_indices = @transform_0, window_bounds = array<i64: 16, 128>}, {transform_indices = @transform_1, window_bounds = array<i64: 16, 128>}, {transform_indices = @transform_2, window_bounds = array<i64: 4, 8, 128>}]} {
    %c0_i32 = arith.constant 0 : i32
    %0 = arith.cmpi eq, %arg1, %c0_i32 : i32
    %1 = arith.extui %0 : i1 to i32
    %c0_i32_0 = arith.constant 0 : i32
    %2 = arith.cmpi ne, %1, %c0_i32_0 : i32
    scf.if %2 {
      %cst_38 = arith.constant 0.000000e+00 : f32
      %67 = vector.broadcast %cst_38 : f32 to vector<4x8x128xf32>
      %c0_39 = arith.constant 0 : index
      %c0_40 = arith.constant 0 : index
      %c0_41 = arith.constant 0 : index
      %68 = vector.load %arg4[%c0_39, %c0_40, %c0_41] : memref<4x8x128xf32, #tpu.memory_space<vmem>>, vector<4x8x128xf32>
      tpu.vector_store %arg4[%c0_39, %c0_40, %c0_41], %67 {strides = array<i32>} : memref<4x8x128xf32, #tpu.memory_space<vmem>>, vector<4x8x128xf32>,
    } else {
    }
    %c0 = arith.constant 0 : index
    %c0_1 = arith.constant 0 : index
    %3 = vector.load %arg2[%c0, %c0_1] : memref<16x128xf32, #tpu.memory_space<vmem>>, vector<16x128xf32>
    %c0_2 = arith.constant 0 : index
    %c0_3 = arith.constant 0 : index
    %4 = vector.load %arg3[%c0_2, %c0_3] : memref<16x128xf32, #tpu.memory_space<vmem>>, vector<16x128xf32>
    %5 = math.absf %3 : vector<16x128xf32>
    %cst = arith.constant 0.000000e+00 : f32
    %6 = vector.broadcast %cst : f32 to vector<16x128xf32>
    %7 = arith.subf %6, %5 : vector<16x128xf32>
    %8 = math.exp %7 : vector<16x128xf32>
    %9 = math.log1p %8 : vector<16x128xf32>
    %cst_4 = arith.constant 0.000000e+00 : f32
    %10 = vector.broadcast %cst_4 : f32 to vector<16x128xf32>
    %11 = arith.subf %10, %3 : vector<16x128xf32>
    %cst_5 = arith.constant 0.000000e+00 : f32
    %12 = vector.broadcast %cst_5 : f32 to vector<16x128xf32>
    %13 = arith.maximumf %11, %12 : vector<16x128xf32>
    %14 = arith.addf %13, %9 : vector<16x128xf32>
    %cst_6 = arith.constant 0.000000e+00 : f32
    %15 = vector.broadcast %cst_6 : f32 to vector<16x128xf32>
    %16 = arith.maximumf %3, %15 : vector<16x128xf32>
    %17 = arith.addf %16, %9 : vector<16x128xf32>
    %cst_7 = arith.constant 1.000000e+02 : f32
    %18 = vector.broadcast %cst_7 : f32 to vector<16x128xf32>
    %19 = arith.minimumf %14, %18 : vector<16x128xf32>
    %20 = arith.mulf %4, %19 : vector<16x128xf32>
    %cst_8 = arith.constant 1.000000e+00 : f32
    %21 = vector.broadcast %cst_8 : f32 to vector<16x128xf32>
    %22 = arith.subf %21, %4 : vector<16x128xf32>
    %cst_9 = arith.constant 1.000000e+02 : f32
    %23 = vector.broadcast %cst_9 : f32 to vector<16x128xf32>
    %24 = arith.minimumf %17, %23 : vector<16x128xf32>
    %25 = arith.mulf %22, %24 : vector<16x128xf32>
    %26 = arith.addf %20, %25 : vector<16x128xf32>
    %cst_10 = arith.constant 0.000000e+00 : f32
    %27 = vector.broadcast %cst_10 : f32 to vector<16x128xf32>
    %28 = arith.cmpf oge, %3, %27 : vector<16x128xf32>
    %cst_11 = arith.constant 1.000000e+00 : f32
    %29 = vector.broadcast %cst_11 : f32 to vector<16x128xf32>
    %30 = arith.select %28, %29, %8 : vector<16x128xi1>, vector<16x128xf32>
    %cst_12 = arith.constant 1.000000e+00 : f32
    %31 = vector.broadcast %cst_12 : f32 to vector<16x128xf32>
    %32 = arith.addf %31, %8 : vector<16x128xf32>
    %33 = arith.divf %30, %32 : vector<16x128xf32>
    %34 = arith.mulf %33, %4 : vector<16x128xf32>
    %c0_13 = arith.constant 0 : index
    %c0_14 = arith.constant 0 : index
    %c0_15 = arith.constant 0 : index
    %35 = vector.load %arg4[%c0_13, %c0_14, %c0_15] : memref<4x8x128xf32, #tpu.memory_space<vmem>>, vector<1x8x128xf32>
    %36 = vector.shape_cast %35 : vector<1x8x128xf32> to vector<8x128xf32>
    %37 = vector.shape_cast %34 : vector<16x128xf32> to vector<2x8x128xf32>
    %cst_16 = arith.constant dense<0.000000e+00> : vector<8x128xf32>
    %38 = vector.multi_reduction <add>, %37, %cst_16 [0] : vector<2x8x128xf32> to vector<8x128xf32>
    %39 = arith.addf %36, %38 : vector<8x128xf32>
    %c0_17 = arith.constant 0 : index
    %c0_18 = arith.constant 0 : index
    %c0_19 = arith.constant 0 : index
    %40 = vector.load %arg4[%c0_17, %c0_18, %c0_19] : memref<4x8x128xf32, #tpu.memory_space<vmem>>, vector<1x8x128xf32>
    %41 = vector.shape_cast %40 : vector<1x8x128xf32> to vector<8x128xf32>
    %42 = vector.shape_cast %39 : vector<8x128xf32> to vector<1x8x128xf32>
    tpu.vector_store %arg4[%c0_17, %c0_18, %c0_19], %42 {strides = array<i32>} : memref<4x8x128xf32, #tpu.memory_space<vmem>>, vector<1x8x128xf32>,
    %c1 = arith.constant 1 : index
    %c0_20 = arith.constant 0 : index
    %c0_21 = arith.constant 0 : index
    %43 = vector.load %arg4[%c1, %c0_20, %c0_21] : memref<4x8x128xf32, #tpu.memory_space<vmem>>, vector<1x8x128xf32>
    %44 = vector.shape_cast %43 : vector<1x8x128xf32> to vector<8x128xf32>
    %45 = vector.shape_cast %33 : vector<16x128xf32> to vector<2x8x128xf32>
    %cst_22 = arith.constant dense<0.000000e+00> : vector<8x128xf32>
    %46 = vector.multi_reduction <add>, %45, %cst_22 [0] : vector<2x8x128xf32> to vector<8x128xf32>
    %47 = arith.addf %44, %46 : vector<8x128xf32>
    %c1_23 = arith.constant 1 : index
    %c0_24 = arith.constant 0 : index
    %c0_25 = arith.constant 0 : index
    %48 = vector.load %arg4[%c1_23, %c0_24, %c0_25] : memref<4x8x128xf32, #tpu.memory_space<vmem>>, vector<1x8x128xf32>
    %49 = vector.shape_cast %48 : vector<1x8x128xf32> to vector<8x128xf32>
    %50 = vector.shape_cast %47 : vector<8x128xf32> to vector<1x8x128xf32>
    tpu.vector_store %arg4[%c1_23, %c0_24, %c0_25], %50 {strides = array<i32>} : memref<4x8x128xf32, #tpu.memory_space<vmem>>, vector<1x8x128xf32>,
    %c2 = arith.constant 2 : index
    %c0_26 = arith.constant 0 : index
    %c0_27 = arith.constant 0 : index
    %51 = vector.load %arg4[%c2, %c0_26, %c0_27] : memref<4x8x128xf32, #tpu.memory_space<vmem>>, vector<1x8x128xf32>
    %52 = vector.shape_cast %51 : vector<1x8x128xf32> to vector<8x128xf32>
    %53 = vector.shape_cast %4 : vector<16x128xf32> to vector<2x8x128xf32>
    %cst_28 = arith.constant dense<0.000000e+00> : vector<8x128xf32>
    %54 = vector.multi_reduction <add>, %53, %cst_28 [0] : vector<2x8x128xf32> to vector<8x128xf32>
    %55 = arith.addf %52, %54 : vector<8x128xf32>
    %c2_29 = arith.constant 2 : index
    %c0_30 = arith.constant 0 : index
    %c0_31 = arith.constant 0 : index
    %56 = vector.load %arg4[%c2_29, %c0_30, %c0_31] : memref<4x8x128xf32, #tpu.memory_space<vmem>>, vector<1x8x128xf32>
    %57 = vector.shape_cast %56 : vector<1x8x128xf32> to vector<8x128xf32>
    %58 = vector.shape_cast %55 : vector<8x128xf32> to vector<1x8x128xf32>
    tpu.vector_store %arg4[%c2_29, %c0_30, %c0_31], %58 {strides = array<i32>} : memref<4x8x128xf32, #tpu.memory_space<vmem>>, vector<1x8x128xf32>,
    %c3 = arith.constant 3 : index
    %c0_32 = arith.constant 0 : index
    %c0_33 = arith.constant 0 : index
    %59 = vector.load %arg4[%c3, %c0_32, %c0_33] : memref<4x8x128xf32, #tpu.memory_space<vmem>>, vector<1x8x128xf32>
    %60 = vector.shape_cast %59 : vector<1x8x128xf32> to vector<8x128xf32>
    %61 = vector.shape_cast %26 : vector<16x128xf32> to vector<2x8x128xf32>
    %cst_34 = arith.constant dense<0.000000e+00> : vector<8x128xf32>
    %62 = vector.multi_reduction <add>, %61, %cst_34 [0] : vector<2x8x128xf32> to vector<8x128xf32>
    %63 = arith.addf %60, %62 : vector<8x128xf32>
    %c3_35 = arith.constant 3 : index
    %c0_36 = arith.constant 0 : index
    %c0_37 = arith.constant 0 : index
    %64 = vector.load %arg4[%c3_35, %c0_36, %c0_37] : memref<4x8x128xf32, #tpu.memory_space<vmem>>, vector<1x8x128xf32>
    %65 = vector.shape_cast %64 : vector<1x8x128xf32> to vector<8x128xf32>
    %66 = vector.shape_cast %63 : vector<8x128xf32> to vector<1x8x128xf32>
    tpu.vector_store %arg4[%c3_35, %c0_36, %c0_37], %66 {strides = array<i32>} : memref<4x8x128xf32, #tpu.memory_space<vmem>>, vector<1x8x128xf32>,
    return
  }
  func.func @transform_0(%arg0: i32, %arg1: i32) -> (i32, i32) {
    %c1_i32 = arith.constant 1 : i32
    %0 = arith.muli %arg0, %c1_i32 : i32
    %1 = arith.addi %0, %arg1 : i32
    %c0_i32 = arith.constant 0 : i32
    %c0_i32_0 = arith.constant 0 : i32
    return %1, %c0_i32 : i32, i32
  }
  func.func @transform_1(%arg0: i32, %arg1: i32) -> (i32, i32) {
    %c1_i32 = arith.constant 1 : i32
    %0 = arith.muli %arg0, %c1_i32 : i32
    %1 = arith.addi %0, %arg1 : i32
    %c0_i32 = arith.constant 0 : i32
    %c0_i32_0 = arith.constant 0 : i32
    return %1, %c0_i32 : i32, i32
  }
  func.func @transform_2(%arg0: i32, %arg1: i32) -> (i32, i32, i32) {
    %c0_i32 = arith.constant 0 : i32
    %c0_i32_0 = arith.constant 0 : i32
    %c0_i32_1 = arith.constant 0 : i32
    return %arg0, %c0_i32, %c0_i32_0 : i32, i32, i32
  }
}

</mosaic_0001>

<bundles_post_ra>
// kernel: tpu_custom_call.1
= control target key start
LH: loop header
LB: loop body
LE: loop exit
PB: predicated region body
PF: predicated region fallthrough
CT: control target
= control target key end

     0   :  { %7 = vsyncpa [#allocation3], 0  ;;  %s295_s0 = inlined_call_operand.hbm [shape: f32[16,128], index: 0, kind: input, shape index: {}]   ;;  %s296_s1 = inlined_call_operand.hbm [shape: f32[16,128], index: 1, kind: input, shape index: {}]   ;;  %s297_s2 = inlined_call_operand.hbm [shape: f32[4,8,128], index: 2, kind: output, shape index: {}]  }
   0x1   :  { %8 = vsyncpa [#allocation6], 0 }
   0x2   :  { %9 = vsyncpa [#allocation4], 0  ;;  %s245_s9 = smov [#allocation2]  }
   0x3   :  { %s19_s10 = sshll.u32 %s245_s9, 4  ;;  %s20_s10 = int_to_ptr.vmem [resolvable:$true] %s19_s10 }
   0x4   :  { %s187_s11 = scalar_lea.vmem %s20_s10, 256  ;;  %p192_p1 = scmp.lt.s32.totalorder %s20_s10, %s20_s10 }
   0x5   :  { %p188_p0 = scmp.ne.s32.totalorder %s20_s10, %s187_s11  ;;  %p193_p2 = scmp.lt.s32.totalorder %s187_s11, %s187_s11 }
   0x7   :  { %p194_p3 = por %p193_p2, %p192_p1 }
   0x9   :  { %p195_p4 = pnand %p194_p3, %p188_p0 }
   0xb   :  { %198 = shalt.err (!%p195_p4)
}
   0xc   :  { %s246_s12 = smov 128   ;;  %s247_s13 = smov 8  }
   0xd   :  { %25 = dma.hbm_to_vmem [thread:$0]  %s295_s0, 256, %s20_s10, [#allocation3], %s246_s12, %s246_s12, %s247_s13  }
   0xe   :  { %s248_s16 = smov [#allocation5]  }
   0xf   :  { %s35_s17 = sshll.u32 %s248_s16, 4  ;;  %s36_s17 = int_to_ptr.vmem [resolvable:$true] %s35_s17 }
  0x10   :  { %s207_s18 = scalar_lea.vmem %s36_s17, 256  ;;  %p212_p6 = scmp.lt.s32.totalorder %s36_s17, %s36_s17 }
  0x11   :  { %p208_p5 = scmp.ne.s32.totalorder %s36_s17, %s207_s18  ;;  %p213_p7 = scmp.lt.s32.totalorder %s207_s18, %s207_s18 }
  0x13   :  { %p214_p8 = por %p213_p7, %p212_p6 }
  0x15   :  { %p215_p9 = pnand %p214_p8, %p208_p5 }
  0x17   :  { %218 = shalt.err (!%p215_p9)
}
  0x18   :  { %41 = dma.hbm_to_vmem [thread:$0]  %s296_s1, 256, %s36_s17, [#allocation6], %s246_s12, %s246_s12, %s247_s13  }
  0x19   :  { %239 = dma.done.wait [#allocation3], 256  }
  0x1a   :  { %240 = vsyncadd [#allocation3], 4294967040 }
  0x1b   :  { %241 = dma.done.wait [#allocation6], 256  }
  0x1c   :  { %242 = vsyncadd [#allocation6], 4294967040  ;;  %v60_v0 = vld [vmem:[#allocation2] sm:$0xff]  ;;  %v61_v1 = vld [vmem:[#allocation2 + $0x8] sm:$0xff]  ;;  %s249_s0 = smov [#allocation7]  }
  0x1d   :  { %v277_v2 = vld [vmem:[#allocation5] sm:$0xff]  ;;  %v279_v3 = vld [vmem:[#allocation5 + $0x8] sm:$0xff]  ;;  %v64_v4 = vand.u32 2147483647, %v60_v0  ;;  %v65_v5 = vand.u32 2147483647, %v61_v1 }
  0x1e   :  { %v135_v6 = vadd.f32 %v279_v3, %v277_v2  ;;  %vm112_vm0 = vcmp.ge.f32.partialorder %v60_v0, 0.0  ;;  %vm113_vm1 = vcmp.ge.f32.partialorder %v61_v1, 0.0  ;;  %v90_v21 = vsub.f32 0.0, %v60_v0  ;;  %s148_s1 = sshll.u32 %s249_s0, 4  ;;  %s149_s1 = int_to_ptr.vmem [resolvable:$true] %s148_s1 }
  0x1f   :  { %v66_v7 = vsub.f32 0.0, %v64_v4  ;;  %v67_v8 = vsub.f32 0.0, %v65_v5  ;;  %v91_v24 = vsub.f32 0.0, %v61_v1  ;;  %v96_v29 = vmax.f32 %v60_v0, 0.0  ;;  %s219_s21 = scalar_lea.vmem %s149_s1, 512  ;;  %p224_p11 = scmp.lt.s32.totalorder %s149_s1, %s149_s1 }
  0x20   :  { %137 = vst [vmem:[#allocation7 + $0x10] sm:$0xff] %v135_v6  ;;  %v97_v30 = vmax.f32 %v61_v1, 0.0  ;;  %v92_v34 = vmax.f32 %v90_v21, 0.0  ;;  %v104_v43 = vsub.f32 1.0, %v277_v2  ;;  %v105_v50 = vsub.f32 1.0, %v279_v3  ;;  %p220_p10 = scmp.ne.s32.totalorder %s149_s1, %s219_s21  ;;  %p225_p12 = scmp.lt.s32.totalorder %s219_s21, %s219_s21 }
  0x21   :  { %v68_v9 = vmul.f32 1.442695, %v66_v7  ;;  %v70_v10 = vmul.f32 1.442695, %v67_v8  ;;  %v93_v38 = vmax.f32 %v91_v24, 0.0 }
  0x22   :  { %p226_p13 = por %p225_p12, %p224_p11 }
  0x23   :  { %167 = vpow2.f32 %v68_v9 }
  0x24   :  { %169 = vpow2.f32 %v70_v10  ;;  %p227_p0 = pnand %p226_p13, %p220_p10 }
  0x30   :  { %v168_v11 = vpop.eup %167 }
  0x31   :  { %v170_v12 = vpop.eup %169  ;;  %v72_v13 = vadd.f32 1.0, %v168_v11  ;;  %v75_v15 = vmul.f32 -0.5, %v168_v11  ;;  %v114_v18 = vsel %vm112_vm0, 1.0, %v168_v11  ;;  %v78_v19 = vand.u32 2147483647, %v168_v11 }
  0x32   :  { %v81_v14 = vadd.f32 1.0, %v170_v12  ;;  %v84_v16 = vmul.f32 -0.5, %v170_v12  ;;  %v115_v22 = vsel %vm113_vm1, 1.0, %v170_v12  ;;  %v87_v23 = vand.u32 2147483647, %v170_v12 }
  0x33   :  { %171 = vrcp.f32 %v72_v13  ;;  %v76_v17 = vadd.f32 1.0, %v75_v15  ;;  %vm79_vm2 = vcmp.lt.f32.partialorder %v78_v19, 0.0004427343 }
  0x34   :  { %173 = vrcp.f32 %v81_v14  ;;  %v85_v20 = vadd.f32 1.0, %v84_v16  ;;  %vm88_vm3 = vcmp.lt.f32.partialorder %v87_v23, 0.0004427343 }
  0x35   :  { %175 = vlog2.f32 %v72_v13  ;;  %v77_v28 = vmul.f32 %v168_v11, %v76_v17 }
  0x36   :  { %177 = vlog2.f32 %v81_v14  ;;  %v86_v33 = vmul.f32 %v170_v12, %v85_v20 }
  0x40   :  { %v172_v25 = vpop.eup %171 }
  0x41   :  { %v174_v26 = vpop.eup %173  ;;  %v119_v27 = vmul.f32 %v172_v25, %v114_v18 }
  0x42   :  { %v176_v31 = vpop.eup %175  ;;  %v121_v32 = vmul.f32 %v174_v26, %v115_v22 }
  0x43   :  { %v178_v35 = vpop.eup %177  ;;  %v122_v36 = vmul.f32 %v119_v27, %v277_v2  ;;  %v74_v37 = vmul.f32 0.6931472, %v176_v31 }
  0x44   :  { %v123_v39 = vmul.f32 %v121_v32, %v279_v3  ;;  %v130_v40 = vadd.f32 %v121_v32, %v119_v27  ;;  %v83_v41 = vmul.f32 0.6931472, %v178_v35 }
  0x45   :  { %v80_v42 = vsel %vm79_vm2, %v77_v28, %v74_v37 }
  0x46   :  { %v125_v44 = vadd.f32 %v123_v39, %v122_v36  ;;  %v89_v45 = vsel %vm88_vm3, %v86_v33, %v83_v41  ;;  %v94_v46 = vadd.f32 %v92_v34, %v80_v42  ;;  %v98_v48 = vadd.f32 %v96_v29, %v80_v42  ;;  %132 = vst [vmem:[#allocation7 + $0x8] sm:$0xff] %v130_v40 }
  0x47   :  { %v95_v47 = vadd.f32 %v93_v38, %v89_v45  ;;  %v99_v49 = vadd.f32 %v97_v30, %v89_v45 }
  0x48   :  { %v100_v51 = vmin.f32 %v94_v46, 100.0  ;;  %v106_v53 = vmin.f32 %v98_v48, 100.0  ;;  %127 = vst [vmem:[#allocation7] sm:$0xff] %v125_v44 }
  0x49   :  { %v101_v52 = vmin.f32 %v95_v47, 100.0  ;;  %v107_v54 = vmin.f32 %v99_v49, 100.0 }
  0x4a   :  { %v102_v55 = vmul.f32 %v100_v51, %v277_v2  ;;  %v108_v57 = vmul.f32 %v106_v53, %v104_v43 }
  0x4b   :  { %v103_v56 = vmul.f32 %v101_v52, %v279_v3  ;;  %v109_v58 = vmul.f32 %v107_v54, %v105_v50 }
  0x4c   :  { %v110_v59 = vadd.f32 %v108_v57, %v102_v55 }
  0x4d   :  { %v111_v60 = vadd.f32 %v109_v58, %v103_v56 }
  0x4f   :  { %v140_v61 = vadd.f32 %v111_v60, %v110_v59 }
  0x51   :  { %142 = vst [vmem:[#allocation7 + $0x18] sm:$0xff] %v140_v61 }
  0x52   :  { %230 = shalt.err (!%p227_p0)
}
  0x53   :  { %154 = dma.vmem_to_hbm [thread:$0]  %s149_s1, 512, %s297_s2, [#allocation4], %s246_s12, %s246_s12, %s247_s13  }
  0x54   :  { %243 = dma.done.wait [#allocation4], 512  }
  0x55   :  { %244 = vsyncadd [#allocation4], 4294966784 }
  0x56   :  { %158 = vsyncpa [#allocation3], 1 }
  0x57   :  { %159 = vsyncpa [#allocation6], 1 }
  0x58   :  { %160 = vsyncpa [#allocation4], 1 }

</bundles_post_ra>
